<compile_context>
chip_gen: v6e
topology: v6e:2x2x1
jax: 0.10.0
libtpu: 0.0.40
codegen_flags: <defaults>
</compile_context>

<pallas_src>
import functools

import jax
import jax.numpy as jnp
from jax.experimental import pallas as pl
from jax.experimental.pallas import tpu as pltpu

_NEG_BIG = -1e30          # finite sentinel for masked logits (never Inf/NaN)
_LANE = 128
_SUB = 8


def _round_up(x, m):
    return ((x + m - 1) // m) * m


def _tpu_vmem_and_cores():
    """Best-effort query of per-core VMEM capacity and TensorCore count."""
    vmem = 64 * 1024 * 1024          # conservative default (v7x per-core)
    cores = 1
    try:
        info = pltpu.get_tpu_info()
        vmem = int(getattr(info, "vmem_capacity_bytes", vmem))
        for name in ("num_cores", "core_count", "tensorcore_count",
                     "num_tensorcores"):
            val = getattr(info, name, None)
            if val:
                cores = int(val)
                break
    except Exception:
        pass
    return vmem, max(1, cores)


def _choose_tiles(n, c, work_budget_bytes):
    """Pick (tile_n, tile_c, n_cls) from a VMEM working-set byte budget.

    The working set per row of a full-C tile is roughly:
      ~4 live full-width f32 temporaries   (cast, exp, iota, select)
      ~6 lane-padded (row, 1) temporaries  (max, lse, tgt, ce, row_ids, acc)
    (everything in VMEM is lane-padded to 128, so small C still costs 128).
    """
    c_pad = _round_up(c, _LANE)
    n_pad = _round_up(n, _SUB)

    per_row_full = 4 * (4 * c_pad) + 6 * (4 * _LANE)
    rows_full_c = max(_SUB, (work_budget_bytes // per_row_full) // _SUB * _SUB)
    target_rows = min(256, n_pad)

    if rows_full_c >= target_rows:
        # Whole class axis in one tile; as many rows as the budget allows.
        return min(rows_full_c, n_pad), c, 1

    # Vocab-scale C: fix the row count, tile the class axis (online logsumexp).
    tile_n = target_rows
    avail = max(work_budget_bytes - 6 * (4 * _LANE) * tile_n,
                4 * (4 * _LANE) * tile_n)
    tile_c = max(_LANE, (avail // (4 * 4 * tile_n)) // _LANE * _LANE)
    if tile_c >= c:
        return tile_n, c, 1
    return tile_n, tile_c, pl.cdiv(c, tile_c)


# --------------------------------------------------------------------------
# Kernel 1: whole class axis fits in one tile (n_cls == 1).
# grid = (n_par, n_seq); out accumulates sum_i CE_i per parallel slice.
# --------------------------------------------------------------------------
def _ce_sum_kernel(targets_ref, logits_ref, out_ref, acc_ref, *,
                   n_valid, n_classes, tile_n, n_seq):
    p = pl.program_id(0)      # parallel (core) axis
    t = pl.program_id(1)      # sequential reduction over row-tiles

    @pl.when(t == 0)
    def _():
        acc_ref[...] = jnp.zeros_like(acc_ref)

    x = logits_ref[...].astype(jnp.float32)       # per-tile cast (VPU, free)
    tgt = targets_ref[...]                        # (tile_n, 1) int32

    row_ids = (p * n_seq + t) * tile_n + jax.lax.broadcasted_iota(
        jnp.int32, (tile_n, 1), 0)
    row_valid = row_ids < n_valid
    # Edge / duplicated blocks contain garbage rows: select them away with a
    # finite value so no Inf/NaN intermediates are ever formed.
    x = jnp.where(row_valid, x, 0.0)

    m = jnp.max(x, axis=-1, keepdims=True)
    lse = jnp.log(jnp.sum(jnp.exp(x - m), axis=-1, keepdims=True)) + m

    col_ids = jax.lax.broadcasted_iota(jnp.int32, (tile_n, n_classes), 1)
    tgt_logit = jnp.sum(jnp.where(col_ids == tgt, x, 0.0),
                        axis=-1, keepdims=True)

    ce = jnp.where(row_valid, lse - tgt_logit, 0.0)
    acc_ref[...] += ce

    @pl.when(t == n_seq - 1)
    def _():
        out_ref[...] = jnp.full((8, 128), jnp.sum(acc_ref[...]),
                                dtype=jnp.float32)


# --------------------------------------------------------------------------
# Kernel 2: class axis tiled, online logsumexp (n_cls > 1, vocab-scale C).
# grid = (n_par, n_seq, n_cls) with the class axis innermost.
# --------------------------------------------------------------------------
def _ce_sum_tiled_c_kernel(targets_ref, logits_ref, out_ref,
                           m_ref, s_ref, tgt_ref, acc_ref, *,
                           n_valid, n_classes, tile_n, tile_c, n_seq, n_cls):
    p = pl.program_id(0)
    t = pl.program_id(1)
    k = pl.program_id(2)

    @pl.when(jnp.logical_and(t == 0, k == 0))
    def _():
        acc_ref[...] = jnp.zeros_like(acc_ref)

    @pl.when(k == 0)
    def _():
        m_ref[...] = jnp.full_like(m_ref, _NEG_BIG)
        s_ref[...] = jnp.zeros_like(s_ref)
        tgt_ref[...] = jnp.zeros_like(tgt_ref)

    x = logits_ref[...].astype(jnp.float32)       # (tile_n, tile_c)
    tgt = targets_ref[...]                        # (tile_n, 1) int32

    row_ids = (p * n_seq + t) * tile_n + jax.lax.broadcasted_iota(
        jnp.int32, (tile_n, 1), 0)
    row_valid = row_ids < n_valid
    col_ids = k * tile_c + jax.lax.broadcasted_iota(
        jnp.int32, (tile_n, tile_c), 1)
    valid = jnp.logical_and(row_valid, col_ids < n_classes)
    x = jnp.where(valid, x, _NEG_BIG)             # finite sentinel, no NaN

    # Online logsumexp update.
    m_prev = m_ref[...]
    m_new = jnp.maximum(m_prev, jnp.max(x, axis=-1, keepdims=True))
    s_ref[...] = (s_ref[...] * jnp.exp(m_prev - m_new)
                  + jnp.sum(jnp.exp(x - m_new), axis=-1, keepdims=True))
    m_ref[...] = m_new

    # Target-logit gather for the classes covered by this tile.
    tgt_ref[...] += jnp.sum(jnp.where(col_ids == tgt, x, 0.0),
                            axis=-1, keepdims=True)

    @pl.when(k == n_cls - 1)
    def _():
        ce = jnp.log(s_ref[...]) + m_ref[...] - tgt_ref[...]
        acc_ref[...] += jnp.where(row_valid, ce, 0.0)

    @pl.when(jnp.logical_and(t == n_seq - 1, k == n_cls - 1))
    def _():
        out_ref[...] = jnp.full((8, 128), jnp.sum(acc_ref[...]),
                                dtype=jnp.float32)


def focal_loss(inputs, targets, alpha=0.25, gamma=2.0, work_budget_bytes=None):
    """inputs: (N, C) float logits (any float dtype); targets: (N,) int."""
    n, c = inputs.shape
    logits = inputs                              # native dtype -> HBM traffic
    targets2d = targets.reshape(n, 1).astype(jnp.int32)

    vmem_cap, num_cores = _tpu_vmem_and_cores()
    if work_budget_bytes is None:
        work_budget_bytes = max(vmem_cap // 4, 4 * 1024 * 1024)
    vmem_limit = int(min(vmem_cap * 3 // 4, 100 * 1024 * 1024))

    tile_n, tile_c, n_cls = _choose_tiles(n, c, work_budget_bytes)
    n_blocks = pl.cdiv(n, tile_n)
    n_par = num_cores if (num_cores > 1 and n_blocks >= 2) else 1
    n_seq = pl.cdiv(n_blocks, n_par)

    def row_block(p, t):
        # Clamp so a (p, t) past the last real row-block never issues an OOB
        # DMA; the in-kernel row mask zeroes its contribution.
        return jnp.minimum(p * n_seq + t, n_blocks - 1)

    out_shape = jax.ShapeDtypeStruct((n_par * 8, 128), jnp.float32)

    if n_cls == 1:
        kernel = functools.partial(_ce_sum_kernel, n_valid=n, n_classes=c,
                                   tile_n=tile_n, n_seq=n_seq)
        out = pl.pallas_call(
            kernel,
            out_shape=out_shape,
            grid=(n_par, n_seq),
            in_specs=[
                pl.BlockSpec((tile_n, 1), lambda p, t: (row_block(p, t), 0)),
                pl.BlockSpec((tile_n, c), lambda p, t: (row_block(p, t), 0)),
            ],
            out_specs=pl.BlockSpec((8, 128), lambda p, t: (p, 0)),
            scratch_shapes=[pltpu.VMEM((tile_n, 1), jnp.float32)],
            compiler_params=pltpu.CompilerParams(
                dimension_semantics=("parallel", "arbitrary"),
                vmem_limit_bytes=vmem_limit,
            ),
        )(targets2d, logits)
    else:
        kernel = functools.partial(_ce_sum_tiled_c_kernel, n_valid=n,
                                   n_classes=c, tile_n=tile_n, tile_c=tile_c,
                                   n_seq=n_seq, n_cls=n_cls)
        out = pl.pallas_call(
            kernel,
            out_shape=out_shape,
            grid=(n_par, n_seq, n_cls),
            in_specs=[
                pl.BlockSpec((tile_n, 1),
                             lambda p, t, k: (row_block(p, t), 0)),
                pl.BlockSpec((tile_n, tile_c),
                             lambda p, t, k: (row_block(p, t), k)),
            ],
            out_specs=pl.BlockSpec((8, 128), lambda p, t, k: (p, 0)),
            scratch_shapes=[pltpu.VMEM((tile_n, 1), jnp.float32)] * 4,
            compiler_params=pltpu.CompilerParams(
                dimension_semantics=("parallel", "arbitrary", "arbitrary"),
                vmem_limit_bytes=vmem_limit,
            ),
        )(targets2d, logits)

    # One CE partial sum per parallel slice (row 0 of each (8, 128) slab).
    ce_mean = jnp.sum(out[0::8, 0]) / jnp.float32(n)

    # Scalar focal transform (matches the quirky PyTorch reduce=None->'mean').
    pt = jnp.exp(-ce_mean)
    one_minus_pt = jnp.maximum(1.0 - pt, 0.0)   # guard pow(negative, float)
    return jnp.float32(alpha) * one_minus_pt ** jnp.float32(gamma) * ce_mean


def _ref_focal(logits, targets, alpha, gamma):
    logp = jax.nn.log_softmax(logits.astype(jnp.float32), axis=-1)
    ce = -jnp.take_along_axis(logp, targets[:, None], axis=-1)[:, 0]
    ce_mean = jnp.mean(ce)
    pt = jnp.exp(-ce_mean)
    return alpha * (1.0 - pt) ** gamma * ce_mean


if __name__ == "__main__":
    ALPHA, GAMMA = 0.25, 2.0
    key = jax.random.PRNGKey(0)

    # --- 1. small case (single row tile, whole class axis) -----------------
    k1, k2, key = jax.random.split(key, 3)
    N, C = 8, 32
    logits = jax.random.normal(k1, (N, C), dtype=jnp.float32)
    targets = jax.random.randint(k2, (N,), 0, C, dtype=jnp.int32)
    loss = focal_loss(logits, targets, ALPHA, GAMMA)
    jax.block_until_ready(loss)
    ref = _ref_focal(logits, targets, ALPHA, GAMMA)
    assert jnp.allclose(loss, ref, rtol=1e-5, atol=1e-6), (loss, ref)

    # --- 2. multiple row tiles + partial edge row block (small work budget) -
    k1, k2, key = jax.random.split(key, 3)
    N, C = 600, 32
    logits = jax.random.normal(k1, (N, C), dtype=jnp.float32)
    targets = jax.random.randint(k2, (N,), 0, C, dtype=jnp.int32)
    budget = 256 * (4 * 4 * 128 + 6 * 4 * 128)        # -> 256-row tiles
    loss = focal_loss(logits, targets, ALPHA, GAMMA, work_budget_bytes=budget)
    jax.block_until_ready(loss)
    ref = _ref_focal(logits, targets, ALPHA, GAMMA)
    assert jnp.allclose(loss, ref, rtol=1e-5, atol=1e-6), (loss, ref)

    # --- 3. class-axis tiling (online logsumexp) + row & column masking -----
    k1, k2, key = jax.random.split(key, 3)
    N, C = 60, 500
    logits = jax.random.normal(k1, (N, C), dtype=jnp.float32)
    targets = jax.random.randint(k2, (N,), 0, C, dtype=jnp.int32)
    loss = focal_loss(logits, targets, ALPHA, GAMMA,
                      work_budget_bytes=64 * 1024)    # forces n_cls > 1
    jax.block_until_ready(loss)
    ref = _ref_focal(logits, targets, ALPHA, GAMMA)
    assert jnp.allclose(loss, ref, rtol=1e-5, atol=1e-6), (loss, ref)

    print("KERNEL_OK")
</pallas_src>

<mosaic_0001>
module attributes {stable_mosaic.version = 11 : i64} {
  func.func @_ce_sum_kernel(%arg0: i32, %arg1: i32, %arg2: memref<8x1xi32, #tpu.memory_space<vmem>>, %arg3: memref<8x32xf32, #tpu.memory_space<vmem>>, %arg4: memref<8x128xf32, #tpu.memory_space<vmem>>, %arg5: memref<8x1xf32, #tpu.memory_space<vmem>>) attributes {dimension_semantics = [#tpu.dimension_semantics<parallel>, #tpu.dimension_semantics<arbitrary>], iteration_bounds = array<i64: 1, 1>, scalar_prefetch = 0 : i64, scratch_operands = 1 : i64, tpu.core_type = #tpu.core_type<tc>, window_params = [{transform_indices = @transform_0, window_bounds = array<i64: 8, 1>}, {transform_indices = @transform_1, window_bounds = array<i64: 8, 32>}, {transform_indices = @transform_2, window_bounds = array<i64: 8, 128>}]} {
    %c0_i32 = arith.constant 0 : i32
    %0 = arith.cmpi eq, %arg1, %c0_i32 : i32
    %1 = arith.extui %0 : i1 to i32
    %c0_i32_0 = arith.constant 0 : i32
    %2 = arith.cmpi ne, %1, %c0_i32_0 : i32
    scf.if %2 {
      %cst_16 = arith.constant 0.000000e+00 : f32
      %42 = vector.broadcast %cst_16 : f32 to vector<8x1xf32>
      %c0_17 = arith.constant 0 : index
      %c0_18 = arith.constant 0 : index
      %43 = vector.load %arg5[%c0_17, %c0_18] : memref<8x1xf32, #tpu.memory_space<vmem>>, vector<8x1xf32>
      tpu.vector_store %arg5[%c0_17, %c0_18], %42 {strides = array<i32>} : memref<8x1xf32, #tpu.memory_space<vmem>>, vector<8x1xf32>,
    } else {
    }
    %c0 = arith.constant 0 : index
    %c0_1 = arith.constant 0 : index
    %3 = vector.load %arg3[%c0, %c0_1] : memref<8x32xf32, #tpu.memory_space<vmem>>, vector<8x32xf32>
    %c0_2 = arith.constant 0 : index
    %c0_3 = arith.constant 0 : index
    %4 = vector.load %arg2[%c0_2, %c0_3] : memref<8x1xi32, #tpu.memory_space<vmem>>, vector<8x1xi32>
    %c1_i32 = arith.constant 1 : i32
    %5 = arith.muli %arg0, %c1_i32 : i32
    %6 = arith.addi %5, %arg1 : i32
    %c8_i32 = arith.constant 8 : i32
    %7 = arith.muli %6, %c8_i32 : i32
    %8 = tpu.iota {dimensions = array<i32: 0>} : vector<8x1xi32>
    %9 = vector.broadcast %7 : i32 to vector<8x1xi32>
    %10 = arith.addi %9, %8 : vector<8x1xi32>
    %c8_i32_4 = arith.constant 8 : i32
    %11 = vector.broadcast %c8_i32_4 : i32 to vector<8x1xi32>
    %12 = arith.cmpi slt, %10, %11 : vector<8x1xi32>
    %cst = arith.constant 0.000000e+00 : f32
    %13 = vector.shape_cast %12 : vector<8x1xi1> to vector<8x1xi1>
    %14 = vector.broadcast %13 : vector<8x1xi1> to vector<8x32xi1>
    %15 = vector.broadcast %cst : f32 to vector<8x32xf32>
    %16 = arith.select %14, %3, %15 : vector<8x32xi1>, vector<8x32xf32>
    %cst_5 = arith.constant dense<0xFF800000> : vector<8xf32>
    %17 = vector.multi_reduction <maximumf>, %16, %cst_5 [1] : vector<8x32xf32> to vector<8xf32>
    %18 = vector.shape_cast %17 : vector<8xf32> to vector<8x1xf32>
    %19 = vector.broadcast %18 : vector<8x1xf32> to vector<8x32xf32>
    %20 = arith.subf %16, %19 : vector<8x32xf32>
    %21 = math.exp %20 : vector<8x32xf32>
    %cst_6 = arith.constant dense<0.000000e+00> : vector<8xf32>
    %22 = vector.multi_reduction <add>, %21, %cst_6 [1] : vector<8x32xf32> to vector<8xf32>
    %23 = vector.shape_cast %22 : vector<8xf32> to vector<8x1xf32>
    %24 = math.log %23 : vector<8x1xf32>
    %25 = arith.addf %24, %18 : vector<8x1xf32>
    %26 = tpu.iota {dimensions = array<i32: 1>} : vector<8x32xi32>
    %27 = vector.broadcast %4 : vector<8x1xi32> to vector<8x32xi32>
    %28 = arith.cmpi eq, %26, %27 : vector<8x32xi32>
    %cst_7 = arith.constant 0.000000e+00 : f32
    %29 = vector.broadcast %cst_7 : f32 to vector<8x32xf32>
    %30 = arith.select %28, %16, %29 : vector<8x32xi1>, vector<8x32xf32>
    %cst_8 = arith.constant dense<0.000000e+00> : vector<8xf32>
    %31 = vector.multi_reduction <add>, %30, %cst_8 [1] : vector<8x32xf32> to vector<8xf32>
    %32 = vector.shape_cast %31 : vector<8xf32> to vector<8x1xf32>
    %33 = arith.subf %25, %32 : vector<8x1xf32>
    %cst_9 = arith.constant 0.000000e+00 : f32
    %34 = vector.broadcast %cst_9 : f32 to vector<8x1xf32>
    %35 = arith.select %12, %33, %34 : vector<8x1xi1>, vector<8x1xf32>
    %c0_10 = arith.constant 0 : index
    %c0_11 = arith.constant 0 : index
    %36 = vector.load %arg5[%c0_10, %c0_11] : memref<8x1xf32, #tpu.memory_space<vmem>>, vector<8x1xf32>
    %37 = arith.addf %36, %35 : vector<8x1xf32>
    %c0_12 = arith.constant 0 : index
    %c0_13 = arith.constant 0 : index
    %38 = vector.load %arg5[%c0_12, %c0_13] : memref<8x1xf32, #tpu.memory_space<vmem>>, vector<8x1xf32>
    tpu.vector_store %arg5[%c0_12, %c0_13], %37 {strides = array<i32>} : memref<8x1xf32, #tpu.memory_space<vmem>>, vector<8x1xf32>,
    %c0_i32_14 = arith.constant 0 : i32
    %39 = arith.cmpi eq, %arg1, %c0_i32_14 : i32
    %40 = arith.extui %39 : i1 to i32
    %c0_i32_15 = arith.constant 0 : i32
    %41 = arith.cmpi ne, %40, %c0_i32_15 : i32
    scf.if %41 {
      %c0_16 = arith.constant 0 : index
      %c0_17 = arith.constant 0 : index
      %42 = vector.load %arg5[%c0_16, %c0_17] : memref<8x1xf32, #tpu.memory_space<vmem>>, vector<8x1xf32>
      %43 = vector.shape_cast %42 : vector<8x1xf32> to vector<1x8x1xf32>
      %cst_18 = arith.constant dense<0.000000e+00> : vector<1xf32>
      %44 = vector.multi_reduction <add>, %43, %cst_18 [1, 2] : vector<1x8x1xf32> to vector<1xf32>
      %45 = vector.shape_cast %44 : vector<1xf32> to vector<1x1x1xf32>
      %46 = vector.extract %45[0, 0, 0] : f32 from vector<1x1x1xf32>
      %47 = vector.broadcast %46 : f32 to vector<8x128xf32>
      %c0_19 = arith.constant 0 : index
      %c0_20 = arith.constant 0 : index
      %48 = vector.load %arg4[%c0_19, %c0_20] : memref<8x128xf32, #tpu.memory_space<vmem>>, vector<8x128xf32>
      tpu.vector_store %arg4[%c0_19, %c0_20], %47 {strides = array<i32>} : memref<8x128xf32, #tpu.memory_space<vmem>>, vector<8x128xf32>,
    } else {
    }
    return
  }
  func.func @transform_0(%arg0: i32, %arg1: i32) -> (i32, i32) {
    %c1_i32 = arith.constant 1 : i32
    %0 = arith.muli %arg0, %c1_i32 : i32
    %1 = arith.addi %0, %arg1 : i32
    %c0_i32 = arith.constant 0 : i32
    %2 = arith.minsi %1, %c0_i32 : i32
    %c0_i32_0 = arith.constant 0 : i32
    %c0_i32_1 = arith.constant 0 : i32
    return %2, %c0_i32_0 : i32, i32
  }
  func.func @transform_1(%arg0: i32, %arg1: i32) -> (i32, i32) {
    %c1_i32 = arith.constant 1 : i32
    %0 = arith.muli %arg0, %c1_i32 : i32
    %1 = arith.addi %0, %arg1 : i32
    %c0_i32 = arith.constant 0 : i32
    %2 = arith.minsi %1, %c0_i32 : i32
    %c0_i32_0 = arith.constant 0 : i32
    %c0_i32_1 = arith.constant 0 : i32
    return %2, %c0_i32_0 : i32, i32
  }
  func.func @transform_2(%arg0: i32, %arg1: i32) -> (i32, i32) {
    %c0_i32 = arith.constant 0 : i32
    %c0_i32_0 = arith.constant 0 : i32
    return %arg0, %c0_i32 : i32, i32
  }
}

</mosaic_0001>

<bundles_post_ra>
// kernel: tpu_custom_call.1
= control target key start
LH: loop header
LB: loop body
LE: loop exit
PB: predicated region body
PF: predicated region fallthrough
CT: control target
= control target key end

     0   :  { %vm84_vm0 = vcmask 261120   ;;  %s217_s0 = inlined_call_operand.vmem [shape: s32[8,1], index: 0, kind: input, shape index: {}]   ;;  %s218_s1 = inlined_call_operand.vmem [shape: f32[8,32], index: 1, kind: input, shape index: {}]   ;;  %s219_s2 = inlined_call_operand.hbm [shape: f32[8,128], index: 2, kind: output, shape index: {}]  }
   0x1   :  { %v72_v0 = vld [vmem:[%s218_s1] sm:$0xff] }
   0x2   :  { %7 = vsyncpa [#allocation4], 0  ;;  %v85_v1 = vsel %vm84_vm0, %v72_v0, -inf  ;;  %v187_v2 = vmov 0   ;;  %v73_v3 = vld [vmem:[%s217_s0] sm:$0xff]  ;;  %v97_v7 = vlaneseq  ;;  %vm70_vm2 = vcmask 7168  }
   0x3   :  { %160 = vset.pattern.permute.xlu0 %v187_v2  ;;  %v188_v14 = vmov 0.0   ;;  %s189_s0 = smov [#allocation3]  }
   0x4   :  { %86 = vmax.xlane.f32.xlu0 %v85_v1  ;;  %v98_v8 = vand.u32 127, %v97_v7  ;;  %71 = vst.msk [vmem:[#allocation2] sm:$0xff] %vm70_vm2, %v188_v14  ;;  %s135_s1 = sshll.u32 %s189_s0, 4  ;;  %s136_s1 = int_to_ptr.vmem [resolvable:$true] %s135_s1 }
   0x5   :  { %s165_s14 = scalar_lea.vmem %s136_s1, 128  ;;  %p170_p1 = scmp.lt.s32.totalorder %s136_s1, %s136_s1 }
   0x6   :  { %p166_p0 = scmp.ne.s32.totalorder %s136_s1, %s165_s14  ;;  %p171_p2 = scmp.lt.s32.totalorder %s165_s14, %s165_s14 }
   0x8   :  { %p172_p3 = por %p171_p2, %p170_p1 }
   0xa   :  { %p173_p4 = pnand %p172_p3, %p166_p0 }
   0xb   :  { %v109_v20 = vld [vmem:[#allocation2] sm:$0xff] }
  0x1a   :  { %100 = vperm.xlu0 %160, %v73_v3  }
  0x8d   :  { %v87_v4 = vpop.xlane.xlu0 %86 }
  0x8e   :  { %v88_v5 = vsub.f32 %v72_v0, %v87_v4 }
  0x90   :  { %v89_v6 = vmul.f32 1.442695, %v88_v5 }
  0x92   :  { %161 = vpow2.f32 %v89_v6 }
  0x95   :  { %v101_v9 = vpop.permute.xlu0 %100 }
  0x96   :  { %vm102_vm1 = vcmp.eq.s32.totalorder %v98_v8, %v101_v9 }
  0x97   :  { %v103_v11 = vsel %vm102_vm1, %v72_v0, 0.0 }
  0x98   :  { %v104_v13 = vsel %vm84_vm0, %v103_v11, 0.0 }
  0x9f   :  { %v162_v10 = vpop.eup %161 }
  0xa0   :  { %v91_v12 = vsel %vm84_vm0, %v162_v10, 0.0 }
  0xa1   :  { %92 = vadd.xlane.f32.xlu1 %v91_v12 }
  0xa5   :  { %105 = vadd.xlane.f32.xlu1 %v104_v13 }
 0x12a   :  { %v93_v15 = vpop.xlane.xlu1 %92 }
 0x12b   :  { %163 = vlog2.f32 %v93_v15 }
 0x12e   :  { %v106_v18 = vpop.xlane.xlu1 %105 }
 0x138   :  { %v164_v16 = vpop.eup %163 }
 0x139   :  { %v95_v17 = vmul.f32 0.6931472, %v164_v16 }
 0x13b   :  { %v96_v19 = vadd.f32 %v95_v17, %v87_v4 }
 0x13d   :  { %v107_v21 = vsub.f32 %v96_v19, %v106_v18 }
 0x13f   :  { %v110_v22 = vadd.f32 %v109_v20, %v107_v21 }
 0x141   :  { %112 = vst.msk [vmem:[#allocation2] sm:$0xff] %vm70_vm2, %v110_v22 }
 0x148   :  { %v116_v23 = vld [vmem:[#allocation2] sm:$0xff] }
 0x149   :  { %v117_v24 = vsel %vm70_vm2, %v116_v23, 0.0 }
 0x14a   :  { %118 = vadd.xlane.f32.xlu1 %v117_v24 }
 0x1d3   :  { %v119_v25 = vpop.xlane.xlu1 %118 }
 0x1d4   :  { %v120_v26 = vrot.slane %v119_v25, 4 }
 0x1d6   :  { %v121_v27 = vadd.f32 %v120_v26, %v119_v25 }
 0x1d8   :  { %v122_v28 = vrot.slane %v121_v27, 2 }
 0x1da   :  { %v123_v29 = vadd.f32 %v122_v28, %v121_v27 }
 0x1dc   :  { %v124_v30 = vrot.slane %v123_v29, 1 }
 0x1de   :  { %v125_v31 = vadd.f32 %v124_v30, %v123_v29 }
 0x1e0   :  { %155 = vpush %v125_v31 }
 0x211   :  { %s156_s13 = spop %155 }
 0x212   :  { %v127_v32 = vstv %s156_s13 }
 0x213   :  { %128 = vst [vmem:[#allocation3] sm:$0xff] %v127_v32 }
 0x214   :  { %176 = shalt.err (!%p173_p4)
}
 0x215   :  { %138 = dma.vmem_to_hbm [thread:$0]  %s136_s1, 128, %s219_s2, [#allocation4]  }
 0x216   :  { %185 = dma.done.wait [#allocation4], 128  }
 0x217   :  { %186 = vsyncadd [#allocation4], 4294967168 }
 0x218   :  { %142 = vsyncpa [#allocation4], 1 }

</bundles_post_ra>
